<compile_context>
chip_gen: v7x
topology: tpu7x:2x2x1
jax: 0.10.0
libtpu: 0.0.40
codegen_flags: <defaults>
</compile_context>

<pallas_src>
import functools

import jax
import jax.numpy as jnp
from jax.experimental import pallas as pl
from jax.experimental.pallas import tpu as pltpu

# ---------------------------------------------------------------------------
# Filter coefficient table (subset needed for deterministic init)
# ---------------------------------------------------------------------------
FILTER_PATTERNS = {
    "smooth": [1.0, -0.5, 0.1, -0.02, 0.004, -0.0008, 0.00015, -3e-05],
}


def get_filter_coefficients(filter_name, order=None):
    coeffs = list(FILTER_PATTERNS[filter_name])
    if order is not None:
        if len(coeffs) > order + 1:
            coeffs = coeffs[: order + 1]
        elif len(coeffs) < order + 1:
            coeffs = coeffs + [0.0] * (order + 1 - len(coeffs))
    return coeffs


def _round_up(x, m):
    return ((x + m - 1) // m) * m


# ---------------------------------------------------------------------------
# Pallas kernel (per-tile, elementwise; global reduction hoisted to wrapper)
# ---------------------------------------------------------------------------
def _spectral_filter_kernel(coeffs_ref, scale_ref, eig_ref, out_ref, *, num_coeffs):
    """coeffs_ref: SMEM f32[C]; scale_ref: SMEM f32[1]; eig/out: VMEM f32[TR, 128]."""
    ev = eig_ref[...]                              # (TILE_R, 128) f32
    x = ev * scale_ref[0] - 1.0                    # = 2 * ev / (max + 1e-8) - 1

    c0 = coeffs_ref[0]
    if num_coeffs == 1:
        result = jnp.full_like(x, c0)
    else:
        c1 = coeffs_ref[1]
        result = c0 + c1 * x                       # T0 = 1, T1 = x (no ones array)
        if num_coeffs > 2:
            t_prev = x
            t_curr = 2.0 * x * x - 1.0             # T2 computed directly
            result = result + coeffs_ref[2] * t_curr
            for i in range(3, num_coeffs):         # static unroll: 2 FMAs / step
                c = coeffs_ref[i]                  # scalar splat from SMEM
                t_next = 2.0 * x * t_curr - t_prev
                result = result + c * t_next
                t_prev, t_curr = t_curr, t_next

    clipped = jnp.minimum(jnp.abs(result), 10.0)   # clamp(max=10.0)
    out_ref[...] = jnp.exp(-clipped) + 1e-6


# ---------------------------------------------------------------------------
# Wrapper
# ---------------------------------------------------------------------------
def universal_spectral_filter(eigenvalues, coeffs, *, tile_rows=1024, min_pallas_n=0):
    """eigenvalues: f32[N] (any N, padded internally); coeffs: f32[filter_order + 1].

    tile_rows:     max sublane-rows per VMEM tile (tile = (tile_rows, 128) f32).
    min_pallas_n:  below this N, fall back to the fused XLA expression (launch
                   overhead dominates for tiny inputs). Default 0 = always Pallas.
    """
    eigenvalues = eigenvalues.astype(jnp.float32)
    coeffs = coeffs.astype(jnp.float32)
    n = eigenvalues.shape[0]
    num_coeffs = coeffs.shape[0]

    if n < min_pallas_n:
        return reference_forward(eigenvalues, coeffs)

    # Global scale computed on the UNPADDED input (so zero-padding below can
    # never perturb the max, even for negative eigenvalues).
    scale = (2.0 / (jnp.max(eigenvalues) + 1e-8)).reshape(1)

    # Lay out as (rows, 128) so the last dim maps onto the 128-lane axis.
    rows = pl.cdiv(n, 128)
    tile_r = min(tile_rows, _round_up(rows, 8))    # sublane dim multiple of 8
    rows_padded = _round_up(rows, tile_r)
    n_padded = rows_padded * 128
    ev2d = jnp.pad(eigenvalues, (0, n_padded - n)).reshape(rows_padded, 128)

    kernel = functools.partial(_spectral_filter_kernel, num_coeffs=num_coeffs)

    out2d = pl.pallas_call(
        kernel,
        out_shape=jax.ShapeDtypeStruct((rows_padded, 128), jnp.float32),
        grid=(rows_padded // tile_r,),
        in_specs=[
            pl.BlockSpec(memory_space=pltpu.SMEM),          # coeffs (scalar table)
            pl.BlockSpec(memory_space=pltpu.SMEM),          # scale  (scalar)
            pl.BlockSpec((tile_r, 128), lambda i: (i, 0)),  # eigenvalue tile
        ],
        out_specs=pl.BlockSpec((tile_r, 128), lambda i: (i, 0)),
        compiler_params=pltpu.CompilerParams(
            dimension_semantics=("parallel",),              # shard tiles over TCs (v7x)
        ),
    )(coeffs, scale, ev2d)

    return out2d.reshape(n_padded)[:n]


# ---------------------------------------------------------------------------
# Pure-JAX reference (mirrors the PyTorch forward exactly)
# ---------------------------------------------------------------------------
def reference_forward(eigenvalues, coeffs):
    max_eig = jnp.max(eigenvalues) + 1e-8
    x = 2.0 * (eigenvalues / max_eig) - 1.0
    result = coeffs[0] * jnp.ones_like(x)
    if coeffs.shape[0] > 1:
        t_prev, t_curr = jnp.ones_like(x), x
        result = result + coeffs[1] * t_curr
        for i in range(2, coeffs.shape[0]):
            t_next = 2.0 * x * t_curr - t_prev
            result = result + coeffs[i] * t_next
            t_prev, t_curr = t_curr, t_next
    return jnp.exp(-jnp.minimum(jnp.abs(result), 10.0)) + 1e-6


if __name__ == "__main__":
    filter_order = 6
    init_filter_name = "smooth"

    # Deterministic parameter init (matches nn.Parameter init in __init__).
    coeffs = jnp.asarray(
        get_filter_coefficients(init_filter_name, order=filter_order),
        dtype=jnp.float32,
    )  # shape (7,)

    key = jax.random.PRNGKey(0)

    # Case 1: small demo spectrum, single tile (default config).
    n1 = 1024
    eig1 = jax.random.uniform(key, (n1,), dtype=jnp.float32, minval=0.0, maxval=2.0)
    out1 = jax.block_until_ready(universal_spectral_filter(eig1, coeffs))
    ref1 = reference_forward(eig1, coeffs)
    assert out1.shape == (n1,) and out1.dtype == jnp.float32
    assert jnp.allclose(out1, ref1, rtol=1e-5, atol=1e-6), "mismatch vs reference (n=1024)"

    # Case 2: non-multiple-of-128 length with a small tile -> exercises padding,
    # multi-step grid, and the auto-pipelined BlockSpec path.
    n2 = 6000
    eig2 = jax.random.uniform(
        jax.random.PRNGKey(1), (n2,), dtype=jnp.float32, minval=0.0, maxval=2.0
    )
    out2 = jax.block_until_ready(universal_spectral_filter(eig2, coeffs, tile_rows=8))
    ref2 = reference_forward(eig2, coeffs)
    assert out2.shape == (n2,) and out2.dtype == jnp.float32
    assert jnp.allclose(out2, ref2, rtol=1e-5, atol=1e-6), "mismatch vs reference (n=6000)"

    print("KERNEL_OK")
</pallas_src>

<mosaic_0001>
module attributes {stable_mosaic.version = 11 : i64} {
  func.func @_spectral_filter_kernel(%arg0: i32, %arg1: memref<7xf32, #tpu.memory_space<smem>>, %arg2: memref<1xf32, #tpu.memory_space<smem>>, %arg3: memref<8x128xf32, #tpu.memory_space<vmem>>, %arg4: memref<8x128xf32, #tpu.memory_space<vmem>>) attributes {dimension_semantics = [#tpu.dimension_semantics<parallel>], iteration_bounds = array<i64: 1>, scalar_prefetch = 0 : i64, scratch_operands = 0 : i64, tpu.core_type = #tpu.core_type<tc>, window_params = [{transform_indices = @transform_0, window_bounds = array<i64: 7>}, {transform_indices = @transform_1, window_bounds = array<i64: 1>}, {transform_indices = @transform_2, window_bounds = array<i64: 8, 128>}, {transform_indices = @transform_3, window_bounds = array<i64: 8, 128>}]} {
    %c0 = arith.constant 0 : index
    %c0_0 = arith.constant 0 : index
    %0 = vector.load %arg3[%c0, %c0_0] : memref<8x128xf32, #tpu.memory_space<vmem>>, vector<8x128xf32>
    %c0_1 = arith.constant 0 : index
    %1 = memref.load %arg2[%c0_1] : memref<1xf32, #tpu.memory_space<smem>>
    %2 = vector.broadcast %1 : f32 to vector<8x128xf32>
    %3 = arith.mulf %0, %2 : vector<8x128xf32>
    %cst = arith.constant 1.000000e+00 : f32
    %4 = vector.broadcast %cst : f32 to vector<8x128xf32>
    %5 = arith.subf %3, %4 : vector<8x128xf32>
    %c0_2 = arith.constant 0 : index
    %6 = memref.load %arg1[%c0_2] : memref<7xf32, #tpu.memory_space<smem>>
    %c1 = arith.constant 1 : index
    %7 = memref.load %arg1[%c1] : memref<7xf32, #tpu.memory_space<smem>>
    %8 = vector.broadcast %7 : f32 to vector<8x128xf32>
    %9 = arith.mulf %8, %5 : vector<8x128xf32>
    %10 = vector.broadcast %6 : f32 to vector<8x128xf32>
    %11 = arith.addf %10, %9 : vector<8x128xf32>
    %cst_3 = arith.constant 2.000000e+00 : f32
    %12 = vector.broadcast %cst_3 : f32 to vector<8x128xf32>
    %13 = arith.mulf %12, %5 : vector<8x128xf32>
    %14 = arith.mulf %13, %5 : vector<8x128xf32>
    %cst_4 = arith.constant 1.000000e+00 : f32
    %15 = vector.broadcast %cst_4 : f32 to vector<8x128xf32>
    %16 = arith.subf %14, %15 : vector<8x128xf32>
    %c2 = arith.constant 2 : index
    %17 = memref.load %arg1[%c2] : memref<7xf32, #tpu.memory_space<smem>>
    %18 = vector.broadcast %17 : f32 to vector<8x128xf32>
    %19 = arith.mulf %18, %16 : vector<8x128xf32>
    %20 = arith.addf %11, %19 : vector<8x128xf32>
    %c3 = arith.constant 3 : index
    %21 = memref.load %arg1[%c3] : memref<7xf32, #tpu.memory_space<smem>>
    %cst_5 = arith.constant 2.000000e+00 : f32
    %22 = vector.broadcast %cst_5 : f32 to vector<8x128xf32>
    %23 = arith.mulf %22, %5 : vector<8x128xf32>
    %24 = arith.mulf %23, %16 : vector<8x128xf32>
    %25 = arith.subf %24, %5 : vector<8x128xf32>
    %26 = vector.broadcast %21 : f32 to vector<8x128xf32>
    %27 = arith.mulf %26, %25 : vector<8x128xf32>
    %28 = arith.addf %20, %27 : vector<8x128xf32>
    %c4 = arith.constant 4 : index
    %29 = memref.load %arg1[%c4] : memref<7xf32, #tpu.memory_space<smem>>
    %cst_6 = arith.constant 2.000000e+00 : f32
    %30 = vector.broadcast %cst_6 : f32 to vector<8x128xf32>
    %31 = arith.mulf %30, %5 : vector<8x128xf32>
    %32 = arith.mulf %31, %25 : vector<8x128xf32>
    %33 = arith.subf %32, %16 : vector<8x128xf32>
    %34 = vector.broadcast %29 : f32 to vector<8x128xf32>
    %35 = arith.mulf %34, %33 : vector<8x128xf32>
    %36 = arith.addf %28, %35 : vector<8x128xf32>
    %c5 = arith.constant 5 : index
    %37 = memref.load %arg1[%c5] : memref<7xf32, #tpu.memory_space<smem>>
    %cst_7 = arith.constant 2.000000e+00 : f32
    %38 = vector.broadcast %cst_7 : f32 to vector<8x128xf32>
    %39 = arith.mulf %38, %5 : vector<8x128xf32>
    %40 = arith.mulf %39, %33 : vector<8x128xf32>
    %41 = arith.subf %40, %25 : vector<8x128xf32>
    %42 = vector.broadcast %37 : f32 to vector<8x128xf32>
    %43 = arith.mulf %42, %41 : vector<8x128xf32>
    %44 = arith.addf %36, %43 : vector<8x128xf32>
    %c6 = arith.constant 6 : index
    %45 = memref.load %arg1[%c6] : memref<7xf32, #tpu.memory_space<smem>>
    %cst_8 = arith.constant 2.000000e+00 : f32
    %46 = vector.broadcast %cst_8 : f32 to vector<8x128xf32>
    %47 = arith.mulf %46, %5 : vector<8x128xf32>
    %48 = arith.mulf %47, %41 : vector<8x128xf32>
    %49 = arith.subf %48, %33 : vector<8x128xf32>
    %50 = vector.broadcast %45 : f32 to vector<8x128xf32>
    %51 = arith.mulf %50, %49 : vector<8x128xf32>
    %52 = arith.addf %44, %51 : vector<8x128xf32>
    %53 = math.absf %52 : vector<8x128xf32>
    %cst_9 = arith.constant 1.000000e+01 : f32
    %54 = vector.broadcast %cst_9 : f32 to vector<8x128xf32>
    %55 = arith.minimumf %53, %54 : vector<8x128xf32>
    %cst_10 = arith.constant 0.000000e+00 : f32
    %56 = vector.broadcast %cst_10 : f32 to vector<8x128xf32>
    %57 = arith.subf %56, %55 : vector<8x128xf32>
    %58 = math.exp %57 : vector<8x128xf32>
    %cst_11 = arith.constant 9.99999997E-7 : f32
    %59 = vector.broadcast %cst_11 : f32 to vector<8x128xf32>
    %60 = arith.addf %58, %59 : vector<8x128xf32>
    %c0_12 = arith.constant 0 : index
    %c0_13 = arith.constant 0 : index
    %61 = vector.load %arg4[%c0_12, %c0_13] : memref<8x128xf32, #tpu.memory_space<vmem>>, vector<8x128xf32>
    tpu.vector_store %arg4[%c0_12, %c0_13], %60 {strides = array<i32>} : memref<8x128xf32, #tpu.memory_space<vmem>>, vector<8x128xf32>,
    return
  }
  func.func @transform_0(%arg0: i32) -> i32 {
    %c0_i32 = arith.constant 0 : i32
    %c0_i32_0 = arith.constant 0 : i32
    return %c0_i32 : i32
  }
  func.func @transform_1(%arg0: i32) -> i32 {
    %c0_i32 = arith.constant 0 : i32
    %c0_i32_0 = arith.constant 0 : i32
    return %c0_i32 : i32
  }
  func.func @transform_2(%arg0: i32) -> (i32, i32) {
    %c0_i32 = arith.constant 0 : i32
    %c0_i32_0 = arith.constant 0 : i32
    return %arg0, %c0_i32 : i32, i32
  }
  func.func @transform_3(%arg0: i32) -> (i32, i32) {
    %c0_i32 = arith.constant 0 : i32
    %c0_i32_0 = arith.constant 0 : i32
    return %arg0, %c0_i32 : i32, i32
  }
}

</mosaic_0001>

<bundles_post_ra>
// kernel: tpu_custom_call.1
= control target key start
LH: loop header
LB: loop body
LE: loop exit
PB: predicated region body
PF: predicated region fallthrough
CT: control target
= control target key end

     0   :  { %9 = vsyncpa [#allocation6], 0  ;;  %s234_s0 = inlined_call_operand.vmem [shape: f32[7], index: 0, kind: input, shape index: {}]   ;;  %s235_s1 = inlined_call_operand.<no memory space> [shape: f32[1], index: 1, kind: input, shape index: {}]   ;;  %s236_s2 = inlined_call_operand.hbm [shape: f32[8,128], index: 2, kind: input, shape index: {}]   ;;  %s237_s3 = inlined_call_operand.hbm [shape: f32[8,128], index: 3, kind: output, shape index: {}]  }
   0x1   :  { %10 = vsyncpa [#allocation4], 0 }
   0x2   :  { %11 = vsyncpa [#allocation5], 0  ;;  %s18_s14 = sshll.u32 %s234_s0, 4  ;;  %s19_s14 = int_to_ptr.vmem [resolvable:$true] %s18_s14 }
   0x3   :  { %s119_s15 = scalar_lea.vmem %s19_s14, 16  ;;  %p124_p1 = scmp.lt.s32.totalorder %s19_s14, %s19_s14 }
   0x4   :  { %p120_p0 = scmp.ne.s32.totalorder %s19_s14, %s119_s15  ;;  %p125_p2 = scmp.lt.s32.totalorder %s119_s15, %s119_s15 }
   0x6   :  { %p126_p3 = por %p125_p2, %p124_p1 }
   0x8   :  { %p127_p4 = pnand %p126_p3, %p120_p0 }
   0xa   :  { %130 = shalt.err (!%p127_p4)
}
   0xb   :  { %s181_s16 = smov [#allocation3]   ;;  %s182_s17 = smov [#allocation7]  }
   0xc   :  { %21 = dma.vmem_to_smem %s19_s14, 16, %s181_s16, [#allocation6]  }
   0xd   :  { %s30_s18 = sshll.u32 %s182_s17, 4  ;;  %s131_s21 = scalar_lea.hbm %s236_s2, 128  ;;  %s31_s18 = int_to_ptr.vmem [resolvable:$true] %s30_s18 }
   0xe   :  { %p132_p5 = scmp.ne.s32.totalorder %s236_s2, %s131_s21  ;;  %p135_p6 = scmp.lt.u32.totalorder %s131_s21, %s236_s2 }
  0x10   :  { %p137_p7 = pnand %p135_p6, %p132_p5 }
  0x12   :  { %140 = shalt.err (!%p137_p7)
}
  0x13   :  { %s141_s25 = scalar_lea.vmem %s31_s18, 128  ;;  %p146_p9 = scmp.lt.s32.totalorder %s31_s18, %s31_s18 }
  0x14   :  { %p142_p8 = scmp.ne.s32.totalorder %s31_s18, %s141_s25  ;;  %p147_p10 = scmp.lt.s32.totalorder %s141_s25, %s141_s25 }
  0x16   :  { %p148_p11 = por %p147_p10, %p146_p9 }
  0x18   :  { %p149_p12 = pnand %p148_p11, %p142_p8 }
  0x1a   :  { %152 = shalt.err (!%p149_p12)
}
  0x1b   :  { %33 = dma.hbm_to_vmem [thread:$0]  %s236_s2, 128, %s31_s18, [#allocation4]  }
  0x1c   :  { %175 = dma.done.wait [#allocation6], 16  }
  0x1d   :  { %176 = vsyncadd [#allocation6], 4294967280 }
  0x1e   :  { %177 = dma.done.wait [#allocation4], 128  }
  0x1f   :  { %178 = vsyncadd [#allocation4], 4294967168 }
  0x20   :  { %40 = sfence }
  0x21   :  { %v41_v0 = vld [vmem:[#allocation7] sm:$0xff]  ;;  %v43_v1 = vstv %s235_s1  ;;  %s46_s30 = sld [smem:[#allocation3]]  ;;  %s107_s4 = sld [smem:[#allocation3 + $0x1]] }
  0x22   :  { %v44_v2 = vmul.f32 %v43_v1, %v41_v0  ;;  %s109_s5 = sld [smem:[#allocation3 + $0x2]]  ;;  %s110_s6 = sld [smem:[#allocation3 + $0x3]] }
  0x23   :  { %s111_s2 = sld [smem:[#allocation3 + $0x4]]  ;;  %s112_s7 = sld [smem:[#allocation3 + $0x5]] }
  0x24   :  { %v106_v3 = vadd.f32 -1.0, %v44_v2  ;;  %s113_s1 = sld [smem:[#allocation3 + $0x6]]  ;;  %s183_s8 = smov [#allocation8]  }
  0x25   :  { %s96_s9 = sshll.u32 %s183_s8, 4  ;;  %s97_s9 = int_to_ptr.vmem [resolvable:$true] %s96_s9 }
  0x26   :  { %v52_v4 = vmul.f32 2.0, %v106_v3  ;;  %s153_s10 = scalar_lea.vmem %s97_s9, 128  ;;  %p158_p0 = scmp.lt.s32.totalorder %s97_s9, %s97_s9 }
  0x27   :  { %v48_v5 = vstv %s107_s4  ;;  %v50_v6 = vstv %s46_s30  ;;  %p154_p13 = scmp.ne.s32.totalorder %s97_s9, %s153_s10  ;;  %p159_p1 = scmp.lt.s32.totalorder %s153_s10, %s153_s10 }
  0x28   :  { %v49_v7 = vmul.f32 %v106_v3, %v48_v5  ;;  %v53_v8 = vmul.f32 %v106_v3, %v52_v4  ;;  %v56_v9 = vstv %s109_s5  ;;  %v62_v14 = vstv %s110_s6 }
  0x29   :  { %v68_v19 = vstv %s111_s2  ;;  %v74_v24 = vstv %s112_s7  ;;  %p160_p2 = por %p159_p1, %p158_p0 }
  0x2a   :  { %v51_v10 = vadd.f32 %v50_v6, %v49_v7  ;;  %v108_v11 = vadd.f32 -1.0, %v53_v8  ;;  %v80_v29 = vstv %s113_s1 }
  0x2b   :  { %p161_p3 = pnand %p160_p2, %p154_p13 }
  0x2c   :  { %v57_v12 = vmul.f32 %v108_v11, %v56_v9  ;;  %v60_v13 = vmul.f32 %v108_v11, %v52_v4 }
  0x2e   :  { %v58_v15 = vadd.f32 %v57_v12, %v51_v10  ;;  %v61_v16 = vsub.f32 %v60_v13, %v106_v3 }
  0x30   :  { %v63_v17 = vmul.f32 %v62_v14, %v61_v16  ;;  %v66_v18 = vmul.f32 %v61_v16, %v52_v4 }
  0x32   :  { %v64_v20 = vadd.f32 %v63_v17, %v58_v15  ;;  %v67_v21 = vsub.f32 %v66_v18, %v108_v11 }
  0x34   :  { %v69_v22 = vmul.f32 %v68_v19, %v67_v21  ;;  %v72_v23 = vmul.f32 %v67_v21, %v52_v4 }
  0x36   :  { %v70_v25 = vadd.f32 %v69_v22, %v64_v20  ;;  %v73_v26 = vsub.f32 %v72_v23, %v61_v16 }
  0x38   :  { %v75_v27 = vmul.f32 %v74_v24, %v73_v26  ;;  %v78_v28 = vmul.f32 %v73_v26, %v52_v4 }
  0x3a   :  { %v76_v30 = vadd.f32 %v75_v27, %v70_v25  ;;  %v79_v31 = vsub.f32 %v78_v28, %v67_v21 }
  0x3c   :  { %v81_v32 = vmul.f32 %v80_v29, %v79_v31 }
  0x3e   :  { %v82_v33 = vadd.f32 %v81_v32, %v76_v30 }
  0x40   :  { %v83_v34 = vand.u32 2147483647, %v82_v33 }
  0x42   :  { %v84_v35 = vmin.f32 %v83_v34, 10.0 }
  0x44   :  { %v85_v36 = vsub.f32 0.0, %v84_v35 }
  0x46   :  { %v86_v37 = vmul.f32 1.442695, %v85_v36 }
  0x48   :  { %117 = vpow2.f32 %v86_v37 }
  0x52   :  { %v118_v38 = vpop.eup %117 }
  0x53   :  { %v88_v39 = vadd.f32 1e-06, %v118_v38 }
  0x55   :  { %89 = vst [vmem:[#allocation8] sm:$0xff] %v88_v39 }
  0x56   :  { %164 = shalt.err (!%p161_p3)
}
  0x57   :  { %s165_s13 = scalar_lea.hbm %s237_s3, 128 }
  0x58   :  { %p166_p4 = scmp.ne.s32.totalorder %s237_s3, %s165_s13  ;;  %p169_p5 = scmp.lt.u32.totalorder %s165_s13, %s237_s3 }
  0x5a   :  { %p171_p6 = pnand %p169_p5, %p166_p4 }
  0x5c   :  { %174 = shalt.err (!%p171_p6)
}
  0x5d   :  { %99 = dma.vmem_to_hbm [thread:$0]  %s97_s9, 128, %s237_s3, [#allocation5]  }
  0x5e   :  { %179 = dma.done.wait [#allocation5], 128  }
  0x5f   :  { %180 = vsyncadd [#allocation5], 4294967168 }
  0x60   :  { %103 = vsyncpa [#allocation4], 1 }
  0x61   :  { %104 = vsyncpa [#allocation5], 1 }
  0x62   :  { %105 = vsyncpa [#allocation6], 1 }

</bundles_post_ra>
